<compile_context>
chip_gen: v7x
topology: tpu7x:2x2x1
jax: 0.10.0
libtpu: 0.0.40
codegen_flags: <defaults>
</compile_context>

<pallas_src>
import functools

import numpy as np
import jax
import jax.numpy as jnp
from jax.experimental import pallas as pl
from jax.experimental.pallas import tpu as pltpu


def _fusion_kernel(x_ref, m_ref, y_ref, a_ref, b_ref, wc_ref, bc_ref, ws_ref,
                   out_ref, xs_ref, *, H, W, C, nb, mxu_bf16):
    """One grid step = `nb` batches folded into the lane dim (HWN = nb*H*W).

    x_ref  : [C, HWN]        x, channel-major, batches folded into lanes
    m_ref  : [3+nb, HWN]     0: col wrap mask, 1: row wrap mask, 2: corner mask,
                             3+b: batch-b lane indicator
    y_ref  : [4, C, HWN]     y split into its 4 stride-2 phases (p = 2*(oh%2)+(ow%2))
    a_ref  : [4C, 4C]        folded ConvTranspose2d taps (bf16 or f32)
    b_ref  : [4C, 1]         ConvTranspose2d bias, tiled per phase
    wc_ref : [2C, 2C]        block-diagonal channel-attention weights (x | y)
    bc_ref : [2C, 1]         channel-attention bias
    ws_ref : [6]  (SMEM)     spatial-attention coefficients
    out_ref: [4, C, HWN]     fused output, phase-major
    xs_ref : [4C, HWN] VMEM  scratch for the matmul RHS slab
    """
    HW = H * W
    HWN = nb * HW
    f32 = jnp.float32
    hi = jax.lax.Precision.HIGHEST

    colmask = m_ref[0:1, :]         # [1, HWN]  zero where l == W-1
    rowmask = m_ref[1:2, :]         # [1, HWN]  zero where m == H-1
    cornermask = m_ref[2:3, :]      # colmask * rowmask

    # --- shifted taps of x via cyclic lane rotation (XLU) + wrap masks ------
    x0 = x_ref[...]                                           # x[m,   l  ]
    xw = pltpu.roll(x0, HWN - 1, axis=1) * colmask            # x[m,   l+1]
    xh = pltpu.roll(x0, HWN - W, axis=1) * rowmask            # x[m+1, l  ]
    xhw = pltpu.roll(x0, HWN - W - 1, axis=1) * cornermask    # x[m+1, l+1]

    # assemble the MXU RHS slab in VMEM scratch (sublane-aligned stores)
    xs_ref[pl.ds(0 * C, C), :] = x0
    xs_ref[pl.ds(1 * C, C), :] = xw
    xs_ref[pl.ds(2 * C, C), :] = xh
    xs_ref[pl.ds(3 * C, C), :] = xhw

    # --- ConvTranspose2d(C,C,3,s=2,p=1,op=1) + ReLU as ONE MXU matmul -------
    lhs = a_ref[...]
    rhs = xs_ref[...].astype(lhs.dtype)          # bf16 operands, f32 accumulation
    prec = None if mxu_bf16 else hi
    up = jnp.dot(lhs, rhs, precision=prec, preferred_element_type=f32)
    up = jnp.maximum(up + b_ref[...], 0.0)       # [4C, HWN], row = p*C + d

    # --- ChannelAtt (synthetic SE-style): per-(batch, channel) gate ---------
    y_ph = [y_ref[p] for p in range(4)]          # 4 x [C, HWN]
    ysum = y_ph[0] + y_ph[1] + y_ph[2] + y_ph[3]
    inv_hw = 1.0 / HW
    col_ids = jax.lax.broadcasted_iota(jnp.int32, (1, nb), 1)   # [1, nb]
    pvx = jnp.zeros((C, nb), f32)
    pvy = jnp.zeros((C, nb), f32)
    for b in range(nb):                           # static unroll over fused batches
        mb = m_ref[3 + b:4 + b, :]                # [1, HWN] batch-b lane indicator
        sel = (col_ids == b).astype(f32)          # [1, nb] one-hot column
        pvx = pvx + jnp.sum(x0 * mb, axis=1, keepdims=True) * inv_hw * sel
        pvy = pvy + jnp.sum(ysum * mb, axis=1, keepdims=True) * (0.25 * inv_hw) * sel
    pv = jnp.concatenate([pvx, pvy], axis=0)      # [2C, nb]
    ac = jax.nn.sigmoid(jnp.dot(wc_ref[...], pv, precision=hi,
                                preferred_element_type=f32) + bc_ref[...])
    acx = jnp.zeros((C, HWN), f32)                # per-batch gate scattered to lanes
    acy = jnp.zeros((C, HWN), f32)
    for b in range(nb):
        mb = m_ref[3 + b:4 + b, :]
        acx = acx + ac[0:C, b:b + 1] * mb
        acy = acy + ac[C:2 * C, b:b + 1] * mb

    # --- SpatialAtt (synthetic) + fused MAC; one lane-dense store per phase -
    w00, w01, w02 = ws_ref[0], ws_ref[1], ws_ref[2]
    w10, w11, w12 = ws_ref[3], ws_ref[4], ws_ref[5]
    for p in range(4):                            # static unroll over phases
        up_p = up[p * C:(p + 1) * C, :]           # [C, HWN] (sublane-aligned slice)
        y_p = y_ph[p]
        mx = jnp.mean(up_p, axis=0, keepdims=True)    # [1, HWN]
        my = jnp.mean(y_p, axis=0, keepdims=True)
        sx = jax.nn.sigmoid(w00 * mx + w01 * my + w02)
        sy = jax.nn.sigmoid(w10 * mx + w11 * my + w12)
        out_ref[p] = (up_p * acx * sx + y_p * acy * sy).astype(out_ref.dtype)


def fusion_block(x_nchw, y_nchw, params, *, nb=2, mxu_bf16=True):
    """upscale=2 branch of FusionBlock.forward (x.shape[2] < y.shape[2])."""
    wt, bt = params["wt"], params["bt"]                 # ConvTranspose2d weight/bias
    wc, bc, ws = params["wc"], params["bc"], params["ws"]
    N, C, H, W = x_nchw.shape
    assert y_nchw.shape == (N, C, 2 * H, 2 * W)
    HW = H * W
    assert HW % 128 == 0, "H*W must be a multiple of 128 (lane-dense stores)"
    assert C % 8 == 0, "C must be a multiple of 8 (sublane-aligned row groups)"
    f32 = jnp.float32

    # batches per grid step (fold batch into the MXU lane dim); keep a divisor of N
    nb = max(1, min(nb, N))
    while N % nb:
        nb -= 1
    HWN = nb * HW

    # x: channel-major, batches folded into the lane dim: [C, N*HW]
    x_f = (x_nchw.astype(f32).reshape(N, C, HW)
           .transpose(1, 0, 2).reshape(C, N * HW))

    # wrap masks for the cyclic lane shifts + per-batch lane indicators
    lane = jnp.arange(HWN, dtype=jnp.int32)
    colmask = (lane % W != W - 1).astype(f32)           # kills l+1 column wrap
    rowmask = ((lane // W) % H != H - 1).astype(f32)    # kills m+1 row wrap
    bmask = (lane[None, :] // HW ==
             jnp.arange(nb, dtype=jnp.int32)[:, None]).astype(f32)
    masks = jnp.concatenate(
        [colmask[None], rowmask[None], (colmask * rowmask)[None], bmask], axis=0)

    # y in phase-major channel-major layout [4, C, N*HW], p = 2*(oh%2)+(ow%2)
    yp = (y_nchw.astype(f32)
          .reshape(N, C, H, 2, W, 2)
          .transpose(3, 5, 1, 0, 2, 4)
          .reshape(4, C, N * HW))

    # fold the 9 ConvTranspose2d taps into one [4C, 4C] block matrix:
    # row = p*C + dout, col = s*C + cin, shifted-copy index
    #   s in {0: x[m,l], 1: x[m,l+1], 2: x[m+1,l], 3: x[m+1,l+1]}
    taps = {0: [(0, 1, 1)],
            1: [(0, 1, 2), (1, 1, 0)],
            2: [(0, 2, 1), (2, 0, 1)],
            3: [(0, 2, 2), (1, 2, 0), (2, 0, 2), (3, 0, 0)]}
    wt = wt.astype(f32)
    a_mat = jnp.zeros((4 * C, 4 * C), f32)
    for p, lst in taps.items():
        for s, kh, kw in lst:
            a_mat = a_mat.at[p * C:(p + 1) * C, s * C:(s + 1) * C].set(
                wt[:, :, kh, kw].T)
    if mxu_bf16:
        a_mat = a_mat.astype(jnp.bfloat16)              # bf16 MXU operands, f32 acc
    b_all = jnp.tile(bt.astype(f32), 4).reshape(4 * C, 1)

    # channel-attention weights as one block-diagonal matrix (x gate | y gate)
    wc_comb = jnp.zeros((2 * C, 2 * C), f32)
    wc_comb = wc_comb.at[:C, :C].set(wc[0].astype(f32).T)
    wc_comb = wc_comb.at[C:, C:].set(wc[1].astype(f32).T)
    bc_comb = bc.astype(f32).reshape(2 * C, 1)
    ws_flat = ws.astype(f32).reshape(6)

    kernel = functools.partial(_fusion_kernel, H=H, W=W, C=C, nb=nb,
                               mxu_bf16=mxu_bf16)
    out_p = pl.pallas_call(
        kernel,
        out_shape=jax.ShapeDtypeStruct((4, C, N * HW), f32),
        grid=(N // nb,),
        in_specs=[
            pl.BlockSpec((C, HWN), lambda i: (0, i)),
            pl.BlockSpec((3 + nb, HWN), lambda i: (0, 0)),
            pl.BlockSpec((4, C, HWN), lambda i: (0, 0, i)),
            pl.BlockSpec((4 * C, 4 * C), lambda i: (0, 0)),
            pl.BlockSpec((4 * C, 1), lambda i: (0, 0)),
            pl.BlockSpec((2 * C, 2 * C), lambda i: (0, 0)),
            pl.BlockSpec((2 * C, 1), lambda i: (0, 0)),
            pl.BlockSpec((6,), lambda i: (0,),
                         memory_space=pltpu.MemorySpace.SMEM),
        ],
        out_specs=pl.BlockSpec((4, C, HWN), lambda i: (0, 0, i)),
        scratch_shapes=[pltpu.VMEM((4 * C, HWN), f32)],
        compiler_params=pltpu.CompilerParams(
            dimension_semantics=("parallel",)),
    )(x_f, masks, yp, a_mat, b_all, wc_comb, bc_comb, ws_flat)

    # phase re-interleave: [4, C, N*HW] -> [N, C, 2H, 2W]
    out = (out_p.reshape(2, 2, C, N, H, W)
           .transpose(3, 2, 4, 0, 5, 1)
           .reshape(N, C, 2 * H, 2 * W))
    return out


def _reference(x, y, params):
    """Pure-JAX NCHW reference with identical semantics (for verification)."""
    wt, bt = params["wt"], params["bt"]
    wc, bc, ws = params["wc"], params["bc"], params["ws"]
    N, C, H, W = x.shape
    hi = jax.lax.Precision.HIGHEST

    # ConvTranspose2d(C,C,3,stride=2,pad=1,out_pad=1) + ReLU
    out = jnp.zeros((N, C, 2 * H + 2, 2 * W + 2), jnp.float32)
    for kh in range(3):
        for kw in range(3):
            t = jnp.einsum("nchw,cd->ndhw", x, wt[:, :, kh, kw], precision=hi)
            out = out.at[:, :, kh:kh + 2 * H:2, kw:kw + 2 * W:2].add(t)
    up = jax.nn.relu(out[:, :, 1:1 + 2 * H, 1:1 + 2 * W]
                     + bt[None, :, None, None])

    px = x.mean(axis=(2, 3))
    py = y.mean(axis=(2, 3))
    acx = jax.nn.sigmoid(jnp.dot(px, wc[0], precision=hi) + bc[0])   # [N, C]
    acy = jax.nn.sigmoid(jnp.dot(py, wc[1], precision=hi) + bc[1])   # [N, C]

    mx = up.mean(axis=1, keepdims=True)
    my = y.mean(axis=1, keepdims=True)
    sx = jax.nn.sigmoid(ws[0, 0] * mx + ws[0, 1] * my + ws[0, 2])
    sy = jax.nn.sigmoid(ws[1, 0] * mx + ws[1, 1] * my + ws[1, 2])

    return up * acx[:, :, None, None] * sx + y * acy[:, :, None, None] * sy


if __name__ == "__main__":
    key = jax.random.PRNGKey(0)
    ks = jax.random.split(key, 7)
    # args.feature_num = 8, upscale = 2.  N=8 / nb=2 -> grid of 4 parallel
    # steps (keeps both v7x TensorCores pipelined), 512 lanes per matmul.
    N, C, H, W = 8, 8, 16, 16
    x = jax.random.normal(ks[0], (N, C, H, W), jnp.float32)
    y = jax.random.normal(ks[1], (N, C, 2 * H, 2 * W), jnp.float32)
    params = dict(
        wt=0.1 * jax.random.normal(ks[2], (C, C, 3, 3), jnp.float32),  # ConvT weight
        bt=0.1 * jax.random.normal(ks[3], (C,), jnp.float32),          # ConvT bias
        wc=0.1 * jax.random.normal(ks[4], (2, C, C), jnp.float32),     # ChannelAtt dense (x, y)
        bc=0.1 * jax.random.normal(ks[5], (2, C), jnp.float32),        # ChannelAtt bias (x, y)
        ws=0.5 * jax.random.normal(ks[6], (2, 3), jnp.float32),        # SpatialAtt coeffs (x, y)
    )

    fn = jax.jit(functools.partial(fusion_block, nb=2, mxu_bf16=True))
    out = jax.block_until_ready(fn(x, y, params))
    ref = jax.block_until_ready(_reference(x, y, params))

    assert out.shape == (N, C, 2 * H, 2 * W)
    # tolerance accounts for bf16 MXU operands (f32 accumulation); with
    # mxu_bf16=False the kernel matches the f32 reference to ~1e-6.
    np.testing.assert_allclose(np.asarray(out), np.asarray(ref),
                               rtol=2e-2, atol=2e-2)
    print("KERNEL_OK")
</pallas_src>

<mosaic_0001>
module attributes {stable_mosaic.version = 11 : i64} {
  func.func @_fusion_kernel(%arg0: i32, %arg1: memref<8x512xf32, #tpu.memory_space<vmem>>, %arg2: memref<5x512xf32, #tpu.memory_space<vmem>>, %arg3: memref<4x8x512xf32, #tpu.memory_space<vmem>>, %arg4: memref<32x32xbf16, #tpu.memory_space<vmem>>, %arg5: memref<32x1xf32, #tpu.memory_space<vmem>>, %arg6: memref<16x16xf32, #tpu.memory_space<vmem>>, %arg7: memref<16x1xf32, #tpu.memory_space<vmem>>, %arg8: memref<6xf32, #tpu.memory_space<smem>>, %arg9: memref<4x8x512xf32, #tpu.memory_space<vmem>>, %arg10: memref<32x512xf32, #tpu.memory_space<vmem>>) attributes {dimension_semantics = [#tpu.dimension_semantics<parallel>], iteration_bounds = array<i64: 4>, scalar_prefetch = 0 : i64, scratch_operands = 1 : i64, tpu.core_type = #tpu.core_type<tc>, window_params = [{transform_indices = @transform_0, window_bounds = array<i64: 8, 512>}, {pipeline_mode = #tpu.pipeline_mode<synchronous>, transform_indices = @transform_1, window_bounds = array<i64: 5, 512>}, {transform_indices = @transform_2, window_bounds = array<i64: 4, 8, 512>}, {pipeline_mode = #tpu.pipeline_mode<synchronous>, transform_indices = @transform_3, window_bounds = array<i64: 32, 32>}, {pipeline_mode = #tpu.pipeline_mode<synchronous>, transform_indices = @transform_4, window_bounds = array<i64: 32, 1>}, {pipeline_mode = #tpu.pipeline_mode<synchronous>, transform_indices = @transform_5, window_bounds = array<i64: 16, 16>}, {pipeline_mode = #tpu.pipeline_mode<synchronous>, transform_indices = @transform_6, window_bounds = array<i64: 16, 1>}, {transform_indices = @transform_7, window_bounds = array<i64: 6>}, {transform_indices = @transform_8, window_bounds = array<i64: 4, 8, 512>}]} {
    %c0 = arith.constant 0 : index
    %c0_0 = arith.constant 0 : index
    %0 = vector.load %arg2[%c0, %c0_0] : memref<5x512xf32, #tpu.memory_space<vmem>>, vector<1x512xf32>
    %c1 = arith.constant 1 : index
    %c0_1 = arith.constant 0 : index
    %1 = vector.load %arg2[%c1, %c0_1] : memref<5x512xf32, #tpu.memory_space<vmem>>, vector<1x512xf32>
    %c2 = arith.constant 2 : index
    %c0_2 = arith.constant 0 : index
    %2 = vector.load %arg2[%c2, %c0_2] : memref<5x512xf32, #tpu.memory_space<vmem>>, vector<1x512xf32>
    %c0_3 = arith.constant 0 : index
    %c0_4 = arith.constant 0 : index
    %3 = vector.load %arg1[%c0_3, %c0_4] : memref<8x512xf32, #tpu.memory_space<vmem>>, vector<8x512xf32>
    %c511_i32 = arith.constant 511 : i32
    %4 = tpu.dynamic_rotate %3 by %c511_i32 dim 1 : vector<8x512xf32>, i32 -> vector<8x512xf32>
    %5 = vector.broadcast %0 : vector<1x512xf32> to vector<8x512xf32>
    %6 = arith.mulf %4, %5 : vector<8x512xf32>
    %c496_i32 = arith.constant 496 : i32
    %7 = tpu.dynamic_rotate %3 by %c496_i32 dim 1 : vector<8x512xf32>, i32 -> vector<8x512xf32>
    %8 = vector.broadcast %1 : vector<1x512xf32> to vector<8x512xf32>
    %9 = arith.mulf %7, %8 : vector<8x512xf32>
    %c495_i32 = arith.constant 495 : i32
    %10 = tpu.dynamic_rotate %3 by %c495_i32 dim 1 : vector<8x512xf32>, i32 -> vector<8x512xf32>
    %11 = vector.broadcast %2 : vector<1x512xf32> to vector<8x512xf32>
    %12 = arith.mulf %10, %11 : vector<8x512xf32>
    %c0_5 = arith.constant 0 : index
    %c0_6 = arith.constant 0 : index
    %13 = vector.load %arg10[%c0_5, %c0_6] : memref<32x512xf32, #tpu.memory_space<vmem>>, vector<8x512xf32>
    tpu.vector_store %arg10[%c0_5, %c0_6], %3 {strides = array<i32>} : memref<32x512xf32, #tpu.memory_space<vmem>>, vector<8x512xf32>,
    %c8 = arith.constant 8 : index
    %c0_7 = arith.constant 0 : index
    %14 = vector.load %arg10[%c8, %c0_7] : memref<32x512xf32, #tpu.memory_space<vmem>>, vector<8x512xf32>
    tpu.vector_store %arg10[%c8, %c0_7], %6 {strides = array<i32>} : memref<32x512xf32, #tpu.memory_space<vmem>>, vector<8x512xf32>,
    %c16 = arith.constant 16 : index
    %c0_8 = arith.constant 0 : index
    %15 = vector.load %arg10[%c16, %c0_8] : memref<32x512xf32, #tpu.memory_space<vmem>>, vector<8x512xf32>
    tpu.vector_store %arg10[%c16, %c0_8], %9 {strides = array<i32>} : memref<32x512xf32, #tpu.memory_space<vmem>>, vector<8x512xf32>,
    %c24 = arith.constant 24 : index
    %c0_9 = arith.constant 0 : index
    %16 = vector.load %arg10[%c24, %c0_9] : memref<32x512xf32, #tpu.memory_space<vmem>>, vector<8x512xf32>
    tpu.vector_store %arg10[%c24, %c0_9], %12 {strides = array<i32>} : memref<32x512xf32, #tpu.memory_space<vmem>>, vector<8x512xf32>,
    %c0_10 = arith.constant 0 : index
    %c0_11 = arith.constant 0 : index
    %17 = vector.load %arg4[%c0_10, %c0_11] : memref<32x32xbf16, #tpu.memory_space<vmem>>, vector<32x32xbf16>
    %c0_12 = arith.constant 0 : index
    %c0_13 = arith.constant 0 : index
    %18 = vector.load %arg10[%c0_12, %c0_13] : memref<32x512xf32, #tpu.memory_space<vmem>>, vector<32x512xf32>
    %19 = arith.truncf %18 : vector<32x512xf32> to vector<32x512xbf16>
    %cst = arith.constant dense<0.000000e+00> : vector<32x512xf32>
    %20 = tpu.matmul %17, %19, %cst {dimension_numbers = #tpu.dot_dimension_numbers<[1], [0], [0], [1], [0, 0, 1, 1], [], []>} : vector<32x32xbf16>, vector<32x512xbf16>, vector<32x512xf32> -> vector<32x512xf32>
    %c0_14 = arith.constant 0 : index
    %c0_15 = arith.constant 0 : index
    %21 = vector.load %arg5[%c0_14, %c0_15] : memref<32x1xf32, #tpu.memory_space<vmem>>, vector<32x1xf32>
    %22 = vector.broadcast %21 : vector<32x1xf32> to vector<32x512xf32>
    %23 = arith.addf %20, %22 : vector<32x512xf32>
    %cst_16 = arith.constant 0.000000e+00 : f32
    %24 = vector.broadcast %cst_16 : f32 to vector<32x512xf32>
    %25 = arith.maximumf %23, %24 : vector<32x512xf32>
    %c0_17 = arith.constant 0 : index
    %c0_18 = arith.constant 0 : index
    %c0_19 = arith.constant 0 : index
    %26 = vector.load %arg3[%c0_17, %c0_18, %c0_19] : memref<4x8x512xf32, #tpu.memory_space<vmem>>, vector<1x8x512xf32>
    %27 = vector.shape_cast %26 : vector<1x8x512xf32> to vector<8x512xf32>
    %c1_20 = arith.constant 1 : index
    %c0_21 = arith.constant 0 : index
    %c0_22 = arith.constant 0 : index
    %28 = vector.load %arg3[%c1_20, %c0_21, %c0_22] : memref<4x8x512xf32, #tpu.memory_space<vmem>>, vector<1x8x512xf32>
    %29 = vector.shape_cast %28 : vector<1x8x512xf32> to vector<8x512xf32>
    %c2_23 = arith.constant 2 : index
    %c0_24 = arith.constant 0 : index
    %c0_25 = arith.constant 0 : index
    %30 = vector.load %arg3[%c2_23, %c0_24, %c0_25] : memref<4x8x512xf32, #tpu.memory_space<vmem>>, vector<1x8x512xf32>
    %31 = vector.shape_cast %30 : vector<1x8x512xf32> to vector<8x512xf32>
    %c3 = arith.constant 3 : index
    %c0_26 = arith.constant 0 : index
    %c0_27 = arith.constant 0 : index
    %32 = vector.load %arg3[%c3, %c0_26, %c0_27] : memref<4x8x512xf32, #tpu.memory_space<vmem>>, vector<1x8x512xf32>
    %33 = vector.shape_cast %32 : vector<1x8x512xf32> to vector<8x512xf32>
    %34 = arith.addf %27, %29 : vector<8x512xf32>
    %35 = arith.addf %34, %31 : vector<8x512xf32>
    %36 = arith.addf %35, %33 : vector<8x512xf32>
    %37 = tpu.iota {dimensions = array<i32: 1>} : vector<1x2xi32>
    %cst_28 = arith.constant 0.000000e+00 : f32
    %38 = vector.broadcast %cst_28 : f32 to vector<8x2xf32>
    %cst_29 = arith.constant 0.000000e+00 : f32
    %39 = vector.broadcast %cst_29 : f32 to vector<8x2xf32>
    %c3_30 = arith.constant 3 : index
    %c0_31 = arith.constant 0 : index
    %40 = vector.load %arg2[%c3_30, %c0_31] : memref<5x512xf32, #tpu.memory_space<vmem>>, vector<1x512xf32>
    %c0_i32 = arith.constant 0 : i32
    %41 = vector.broadcast %c0_i32 : i32 to vector<1x2xi32>
    %42 = arith.cmpi eq, %37, %41 : vector<1x2xi32>
    %43 = arith.extui %42 : vector<1x2xi1> to vector<1x2xi32>
    %44 = arith.sitofp %43 : vector<1x2xi32> to vector<1x2xf32>
    %45 = vector.broadcast %40 : vector<1x512xf32> to vector<8x512xf32>
    %46 = arith.mulf %3, %45 : vector<8x512xf32>
    %cst_32 = arith.constant dense<0.000000e+00> : vector<8xf32>
    %47 = vector.multi_reduction <add>, %46, %cst_32 [1] : vector<8x512xf32> to vector<8xf32>
    %48 = vector.shape_cast %47 : vector<8xf32> to vector<8x1xf32>
    %cst_33 = arith.constant 3.906250e-03 : f32
    %49 = vector.broadcast %cst_33 : f32 to vector<8x1xf32>
    %50 = arith.mulf %48, %49 : vector<8x1xf32>
    %51 = vector.broadcast %50 : vector<8x1xf32> to vector<8x2xf32>
    %52 = vector.broadcast %44 : vector<1x2xf32> to vector<8x2xf32>
    %53 = arith.mulf %51, %52 : vector<8x2xf32>
    %54 = arith.addf %38, %53 : vector<8x2xf32>
    %55 = vector.broadcast %40 : vector<1x512xf32> to vector<8x512xf32>
    %56 = arith.mulf %36, %55 : vector<8x512xf32>
    %cst_34 = arith.constant dense<0.000000e+00> : vector<8xf32>
    %57 = vector.multi_reduction <add>, %56, %cst_34 [1] : vector<8x512xf32> to vector<8xf32>
    %58 = vector.shape_cast %57 : vector<8xf32> to vector<8x1xf32>
    %cst_35 = arith.constant 9.765625E-4 : f32
    %59 = vector.broadcast %cst_35 : f32 to vector<8x1xf32>
    %60 = arith.mulf %58, %59 : vector<8x1xf32>
    %61 = vector.broadcast %60 : vector<8x1xf32> to vector<8x2xf32>
    %62 = vector.broadcast %44 : vector<1x2xf32> to vector<8x2xf32>
    %63 = arith.mulf %61, %62 : vector<8x2xf32>
    %64 = arith.addf %39, %63 : vector<8x2xf32>
    %c4 = arith.constant 4 : index
    %c0_36 = arith.constant 0 : index
    %65 = vector.load %arg2[%c4, %c0_36] : memref<5x512xf32, #tpu.memory_space<vmem>>, vector<1x512xf32>
    %c1_i32 = arith.constant 1 : i32
    %66 = vector.broadcast %c1_i32 : i32 to vector<1x2xi32>
    %67 = arith.cmpi eq, %37, %66 : vector<1x2xi32>
    %68 = arith.extui %67 : vector<1x2xi1> to vector<1x2xi32>
    %69 = arith.sitofp %68 : vector<1x2xi32> to vector<1x2xf32>
    %70 = vector.broadcast %65 : vector<1x512xf32> to vector<8x512xf32>
    %71 = arith.mulf %3, %70 : vector<8x512xf32>
    %cst_37 = arith.constant dense<0.000000e+00> : vector<8xf32>
    %72 = vector.multi_reduction <add>, %71, %cst_37 [1] : vector<8x512xf32> to vector<8xf32>
    %73 = vector.shape_cast %72 : vector<8xf32> to vector<8x1xf32>
    %cst_38 = arith.constant 3.906250e-03 : f32
    %74 = vector.broadcast %cst_38 : f32 to vector<8x1xf32>
    %75 = arith.mulf %73, %74 : vector<8x1xf32>
    %76 = vector.broadcast %75 : vector<8x1xf32> to vector<8x2xf32>
    %77 = vector.broadcast %69 : vector<1x2xf32> to vector<8x2xf32>
    %78 = arith.mulf %76, %77 : vector<8x2xf32>
    %79 = arith.addf %54, %78 : vector<8x2xf32>
    %80 = vector.broadcast %65 : vector<1x512xf32> to vector<8x512xf32>
    %81 = arith.mulf %36, %80 : vector<8x512xf32>
    %cst_39 = arith.constant dense<0.000000e+00> : vector<8xf32>
    %82 = vector.multi_reduction <add>, %81, %cst_39 [1] : vector<8x512xf32> to vector<8xf32>
    %83 = vector.shape_cast %82 : vector<8xf32> to vector<8x1xf32>
    %cst_40 = arith.constant 9.765625E-4 : f32
    %84 = vector.broadcast %cst_40 : f32 to vector<8x1xf32>
    %85 = arith.mulf %83, %84 : vector<8x1xf32>
    %86 = vector.broadcast %85 : vector<8x1xf32> to vector<8x2xf32>
    %87 = vector.broadcast %69 : vector<1x2xf32> to vector<8x2xf32>
    %88 = arith.mulf %86, %87 : vector<8x2xf32>
    %89 = arith.addf %64, %88 : vector<8x2xf32>
    %90 = tpu.concatenate %79, %89 in 0 : vector<8x2xf32>, vector<8x2xf32> -> vector<16x2xf32>
    %c0_41 = arith.constant 0 : index
    %c0_42 = arith.constant 0 : index
    %91 = vector.load %arg6[%c0_41, %c0_42] : memref<16x16xf32, #tpu.memory_space<vmem>>, vector<16x16xf32>
    %cst_43 = arith.constant dense<0.000000e+00> : vector<16x2xf32>
    %92 = tpu.matmul %91, %90, %cst_43 {dimension_numbers = #tpu.dot_dimension_numbers<[1], [0], [0], [1], [0, 0, 1, 1], [], []>, precision = #tpu.contract_precision<fp32>} : vector<16x16xf32>, vector<16x2xf32>, vector<16x2xf32> -> vector<16x2xf32>
    %c0_44 = arith.constant 0 : index
    %c0_45 = arith.constant 0 : index
    %93 = vector.load %arg7[%c0_44, %c0_45] : memref<16x1xf32, #tpu.memory_space<vmem>>, vector<16x1xf32>
    %94 = vector.broadcast %93 : vector<16x1xf32> to vector<16x2xf32>
    %95 = arith.addf %92, %94 : vector<16x2xf32>
    %96 = arith.negf %95 : vector<16x2xf32>
    %97 = math.exp %96 : vector<16x2xf32>
    %cst_46 = arith.constant 1.000000e+00 : f32
    %98 = vector.broadcast %cst_46 : f32 to vector<16x2xf32>
    %99 = arith.addf %98, %97 : vector<16x2xf32>
    %100 = arith.divf %98, %99 : vector<16x2xf32>
    %cst_47 = arith.constant 0.000000e+00 : f32
    %101 = vector.broadcast %cst_47 : f32 to vector<8x512xf32>
    %cst_48 = arith.constant 0.000000e+00 : f32
    %102 = vector.broadcast %cst_48 : f32 to vector<8x512xf32>
    %c3_49 = arith.constant 3 : index
    %c0_50 = arith.constant 0 : index
    %103 = vector.load %arg2[%c3_49, %c0_50] : memref<5x512xf32, #tpu.memory_space<vmem>>, vector<1x512xf32>
    %104 = vector.extract_strided_slice %100 {offsets = [0, 0], sizes = [8, 1], strides = [1, 1]} : vector<16x2xf32> to vector<8x1xf32>
    %105 = vector.broadcast %104 : vector<8x1xf32> to vector<8x512xf32>
    %106 = vector.broadcast %103 : vector<1x512xf32> to vector<8x512xf32>
    %107 = arith.mulf %105, %106 : vector<8x512xf32>
    %108 = arith.addf %101, %107 : vector<8x512xf32>
    %109 = vector.extract_strided_slice %100 {offsets = [8, 0], sizes = [8, 1], strides = [1, 1]} : vector<16x2xf32> to vector<8x1xf32>
    %110 = vector.broadcast %109 : vector<8x1xf32> to vector<8x512xf32>
    %111 = vector.broadcast %103 : vector<1x512xf32> to vector<8x512xf32>
    %112 = arith.mulf %110, %111 : vector<8x512xf32>
    %113 = arith.addf %102, %112 : vector<8x512xf32>
    %c4_51 = arith.constant 4 : index
    %c0_52 = arith.constant 0 : index
    %114 = vector.load %arg2[%c4_51, %c0_52] : memref<5x512xf32, #tpu.memory_space<vmem>>, vector<1x512xf32>
    %115 = vector.extract_strided_slice %100 {offsets = [0, 1], sizes = [8, 1], strides = [1, 1]} : vector<16x2xf32> to vector<8x1xf32>
    %116 = vector.broadcast %115 : vector<8x1xf32> to vector<8x512xf32>
    %117 = vector.broadcast %114 : vector<1x512xf32> to vector<8x512xf32>
    %118 = arith.mulf %116, %117 : vector<8x512xf32>
    %119 = arith.addf %108, %118 : vector<8x512xf32>
    %120 = vector.extract_strided_slice %100 {offsets = [8, 1], sizes = [8, 1], strides = [1, 1]} : vector<16x2xf32> to vector<8x1xf32>
    %121 = vector.broadcast %120 : vector<8x1xf32> to vector<8x512xf32>
    %122 = vector.broadcast %114 : vector<1x512xf32> to vector<8x512xf32>
    %123 = arith.mulf %121, %122 : vector<8x512xf32>
    %124 = arith.addf %113, %123 : vector<8x512xf32>
    %c0_53 = arith.constant 0 : index
    %125 = memref.load %arg8[%c0_53] : memref<6xf32, #tpu.memory_space<smem>>
    %c1_54 = arith.constant 1 : index
    %126 = memref.load %arg8[%c1_54] : memref<6xf32, #tpu.memory_space<smem>>
    %c2_55 = arith.constant 2 : index
    %127 = memref.load %arg8[%c2_55] : memref<6xf32, #tpu.memory_space<smem>>
    %c3_56 = arith.constant 3 : index
    %128 = memref.load %arg8[%c3_56] : memref<6xf32, #tpu.memory_space<smem>>
    %c4_57 = arith.constant 4 : index
    %129 = memref.load %arg8[%c4_57] : memref<6xf32, #tpu.memory_space<smem>>
    %c5 = arith.constant 5 : index
    %130 = memref.load %arg8[%c5] : memref<6xf32, #tpu.memory_space<smem>>
    %131 = vector.extract_strided_slice %25 {offsets = [0, 0], sizes = [8, 512], strides = [1, 1]} : vector<32x512xf32> to vector<8x512xf32>
    %cst_58 = arith.constant dense<0.000000e+00> : vector<512xf32>
    %132 = vector.multi_reduction <add>, %131, %cst_58 [0] : vector<8x512xf32> to vector<512xf32>
    %133 = vector.shape_cast %132 : vector<512xf32> to vector<1x512xf32>
    %cst_59 = arith.constant 8.000000e+00 : f32
    %134 = vector.broadcast %cst_59 : f32 to vector<1x512xf32>
    %135 = arith.divf %133, %134 : vector<1x512xf32>
    %cst_60 = arith.constant dense<0.000000e+00> : vector<512xf32>
    %136 = vector.multi_reduction <add>, %27, %cst_60 [0] : vector<8x512xf32> to vector<512xf32>
    %137 = vector.shape_cast %136 : vector<512xf32> to vector<1x512xf32>
    %cst_61 = arith.constant 8.000000e+00 : f32
    %138 = vector.broadcast %cst_61 : f32 to vector<1x512xf32>
    %139 = arith.divf %137, %138 : vector<1x512xf32>
    %140 = vector.broadcast %125 : f32 to vector<1x512xf32>
    %141 = arith.mulf %140, %135 : vector<1x512xf32>
    %142 = vector.broadcast %126 : f32 to vector<1x512xf32>
    %143 = arith.mulf %142, %139 : vector<1x512xf32>
    %144 = arith.addf %141, %143 : vector<1x512xf32>
    %145 = vector.broadcast %127 : f32 to vector<1x512xf32>
    %146 = arith.addf %144, %145 : vector<1x512xf32>
    %147 = arith.negf %146 : vector<1x512xf32>
    %148 = math.exp %147 : vector<1x512xf32>
    %cst_62 = arith.constant 1.000000e+00 : f32
    %149 = vector.broadcast %cst_62 : f32 to vector<1x512xf32>
    %150 = arith.addf %149, %148 : vector<1x512xf32>
    %151 = arith.divf %149, %150 : vector<1x512xf32>
    %152 = vector.broadcast %128 : f32 to vector<1x512xf32>
    %153 = arith.mulf %152, %135 : vector<1x512xf32>
    %154 = vector.broadcast %129 : f32 to vector<1x512xf32>
    %155 = arith.mulf %154, %139 : vector<1x512xf32>
    %156 = arith.addf %153, %155 : vector<1x512xf32>
    %157 = vector.broadcast %130 : f32 to vector<1x512xf32>
    %158 = arith.addf %156, %157 : vector<1x512xf32>
    %159 = arith.negf %158 : vector<1x512xf32>
    %160 = math.exp %159 : vector<1x512xf32>
    %cst_63 = arith.constant 1.000000e+00 : f32
    %161 = vector.broadcast %cst_63 : f32 to vector<1x512xf32>
    %162 = arith.addf %161, %160 : vector<1x512xf32>
    %163 = arith.divf %161, %162 : vector<1x512xf32>
    %164 = arith.mulf %131, %119 : vector<8x512xf32>
    %165 = vector.broadcast %151 : vector<1x512xf32> to vector<8x512xf32>
    %166 = arith.mulf %164, %165 : vector<8x512xf32>
    %167 = arith.mulf %27, %124 : vector<8x512xf32>
    %168 = vector.broadcast %163 : vector<1x512xf32> to vector<8x512xf32>
    %169 = arith.mulf %167, %168 : vector<8x512xf32>
    %170 = arith.addf %166, %169 : vector<8x512xf32>
    %c0_64 = arith.constant 0 : index
    %c0_65 = arith.constant 0 : index
    %c0_66 = arith.constant 0 : index
    %171 = vector.load %arg9[%c0_64, %c0_65, %c0_66] : memref<4x8x512xf32, #tpu.memory_space<vmem>>, vector<1x8x512xf32>
    %172 = vector.shape_cast %171 : vector<1x8x512xf32> to vector<8x512xf32>
    %173 = vector.shape_cast %170 : vector<8x512xf32> to vector<1x8x512xf32>
    tpu.vector_store %arg9[%c0_64, %c0_65, %c0_66], %173 {strides = array<i32>} : memref<4x8x512xf32, #tpu.memory_space<vmem>>, vector<1x8x512xf32>,
    %174 = vector.extract_strided_slice %25 {offsets = [8, 0], sizes = [8, 512], strides = [1, 1]} : vector<32x512xf32> to vector<8x512xf32>
    %cst_67 = arith.constant dense<0.000000e+00> : vector<512xf32>
    %175 = vector.multi_reduction <add>, %174, %cst_67 [0] : vector<8x512xf32> to vector<512xf32>
    %176 = vector.shape_cast %175 : vector<512xf32> to vector<1x512xf32>
    %cst_68 = arith.constant 8.000000e+00 : f32
    %177 = vector.broadcast %cst_68 : f32 to vector<1x512xf32>
    %178 = arith.divf %176, %177 : vector<1x512xf32>
    %cst_69 = arith.constant dense<0.000000e+00> : vector<512xf32>
    %179 = vector.multi_reduction <add>, %29, %cst_69 [0] : vector<8x512xf32> to vector<512xf32>
    %180 = vector.shape_cast %179 : vector<512xf32> to vector<1x512xf32>
    %cst_70 = arith.constant 8.000000e+00 : f32
    %181 = vector.broadcast %cst_70 : f32 to vector<1x512xf32>
    %182 = arith.divf %180, %181 : vector<1x512xf32>
    %183 = vector.broadcast %125 : f32 to vector<1x512xf32>
    %184 = arith.mulf %183, %178 : vector<1x512xf32>
    %185 = vector.broadcast %126 : f32 to vector<1x512xf32>
    %186 = arith.mulf %185, %182 : vector<1x512xf32>
    %187 = arith.addf %184, %186 : vector<1x512xf32>
    %188 = vector.broadcast %127 : f32 to vector<1x512xf32>
    %189 = arith.addf %187, %188 : vector<1x512xf32>
    %190 = arith.negf %189 : vector<1x512xf32>
    %191 = math.exp %190 : vector<1x512xf32>
    %cst_71 = arith.constant 1.000000e+00 : f32
    %192 = vector.broadcast %cst_71 : f32 to vector<1x512xf32>
    %193 = arith.addf %192, %191 : vector<1x512xf32>
    %194 = arith.divf %192, %193 : vector<1x512xf32>
    %195 = vector.broadcast %128 : f32 to vector<1x512xf32>
    %196 = arith.mulf %195, %178 : vector<1x512xf32>
    %197 = vector.broadcast %129 : f32 to vector<1x512xf32>
    %198 = arith.mulf %197, %182 : vector<1x512xf32>
    %199 = arith.addf %196, %198 : vector<1x512xf32>
    %200 = vector.broadcast %130 : f32 to vector<1x512xf32>
    %201 = arith.addf %199, %200 : vector<1x512xf32>
    %202 = arith.negf %201 : vector<1x512xf32>
    %203 = math.exp %202 : vector<1x512xf32>
    %cst_72 = arith.constant 1.000000e+00 : f32
    %204 = vector.broadcast %cst_72 : f32 to vector<1x512xf32>
    %205 = arith.addf %204, %203 : vector<1x512xf32>
    %206 = arith.divf %204, %205 : vector<1x512xf32>
    %207 = arith.mulf %174, %119 : vector<8x512xf32>
    %208 = vector.broadcast %194 : vector<1x512xf32> to vector<8x512xf32>
    %209 = arith.mulf %207, %208 : vector<8x512xf32>
    %210 = arith.mulf %29, %124 : vector<8x512xf32>
    %211 = vector.broadcast %206 : vector<1x512xf32> to vector<8x512xf32>
    %212 = arith.mulf %210, %211 : vector<8x512xf32>
    %213 = arith.addf %209, %212 : vector<8x512xf32>
    %c1_73 = arith.constant 1 : index
    %c0_74 = arith.constant 0 : index
    %c0_75 = arith.constant 0 : index
    %214 = vector.load %arg9[%c1_73, %c0_74, %c0_75] : memref<4x8x512xf32, #tpu.memory_space<vmem>>, vector<1x8x512xf32>
    %215 = vector.shape_cast %214 : vector<1x8x512xf32> to vector<8x512xf32>
    %216 = vector.shape_cast %213 : vector<8x512xf32> to vector<1x8x512xf32>
    tpu.vector_store %arg9[%c1_73, %c0_74, %c0_75], %216 {strides = array<i32>} : memref<4x8x512xf32, #tpu.memory_space<vmem>>, vector<1x8x512xf32>,
    %217 = vector.extract_strided_slice %25 {offsets = [16, 0], sizes = [8, 512], strides = [1, 1]} : vector<32x512xf32> to vector<8x512xf32>
    %cst_76 = arith.constant dense<0.000000e+00> : vector<512xf32>
    %218 = vector.multi_reduction <add>, %217, %cst_76 [0] : vector<8x512xf32> to vector<512xf32>
    %219 = vector.shape_cast %218 : vector<512xf32> to vector<1x512xf32>
    %cst_77 = arith.constant 8.000000e+00 : f32
    %220 = vector.broadcast %cst_77 : f32 to vector<1x512xf32>
    %221 = arith.divf %219, %220 : vector<1x512xf32>
    %cst_78 = arith.constant dense<0.000000e+00> : vector<512xf32>
    %222 = vector.multi_reduction <add>, %31, %cst_78 [0] : vector<8x512xf32> to vector<512xf32>
    %223 = vector.shape_cast %222 : vector<512xf32> to vector<1x512xf32>
    %cst_79 = arith.constant 8.000000e+00 : f32
    %224 = vector.broadcast %cst_79 : f32 to vector<1x512xf32>
    %225 = arith.divf %223, %224 : vector<1x512xf32>
    %226 = vector.broadcast %125 : f32 to vector<1x512xf32>
    %227 = arith.mulf %226, %221 : vector<1x512xf32>
    %228 = vector.broadcast %126 : f32 to vector<1x512xf32>
    %229 = arith.mulf %228, %225 : vector<1x512xf32>
    %230 = arith.addf %227, %229 : vector<1x512xf32>
    %231 = vector.broadcast %127 : f32 to vector<1x512xf32>
    %232 = arith.addf %230, %231 : vector<1x512xf32>
    %233 = arith.negf %232 : vector<1x512xf32>
    %234 = math.exp %233 : vector<1x512xf32>
    %cst_80 = arith.constant 1.000000e+00 : f32
    %235 = vector.broadcast %cst_80 : f32 to vector<1x512xf32>
    %236 = arith.addf %235, %234 : vector<1x512xf32>
    %237 = arith.divf %235, %236 : vector<1x512xf32>
    %238 = vector.broadcast %128 : f32 to vector<1x512xf32>
    %239 = arith.mulf %238, %221 : vector<1x512xf32>
    %240 = vector.broadcast %129 : f32 to vector<1x512xf32>
    %241 = arith.mulf %240, %225 : vector<1x512xf32>
    %242 = arith.addf %239, %241 : vector<1x512xf32>
    %243 = vector.broadcast %130 : f32 to vector<1x512xf32>
    %244 = arith.addf %242, %243 : vector<1x512xf32>
    %245 = arith.negf %244 : vector<1x512xf32>
    %246 = math.exp %245 : vector<1x512xf32>
    %cst_81 = arith.constant 1.000000e+00 : f32
    %247 = vector.broadcast %cst_81 : f32 to vector<1x512xf32>
    %248 = arith.addf %247, %246 : vector<1x512xf32>
    %249 = arith.divf %247, %248 : vector<1x512xf32>
    %250 = arith.mulf %217, %119 : vector<8x512xf32>
    %251 = vector.broadcast %237 : vector<1x512xf32> to vector<8x512xf32>
    %252 = arith.mulf %250, %251 : vector<8x512xf32>
    %253 = arith.mulf %31, %124 : vector<8x512xf32>
    %254 = vector.broadcast %249 : vector<1x512xf32> to vector<8x512xf32>
    %255 = arith.mulf %253, %254 : vector<8x512xf32>
    %256 = arith.addf %252, %255 : vector<8x512xf32>
    %c2_82 = arith.constant 2 : index
    %c0_83 = arith.constant 0 : index
    %c0_84 = arith.constant 0 : index
    %257 = vector.load %arg9[%c2_82, %c0_83, %c0_84] : memref<4x8x512xf32, #tpu.memory_space<vmem>>, vector<1x8x512xf32>
    %258 = vector.shape_cast %257 : vector<1x8x512xf32> to vector<8x512xf32>
    %259 = vector.shape_cast %256 : vector<8x512xf32> to vector<1x8x512xf32>
    tpu.vector_store %arg9[%c2_82, %c0_83, %c0_84], %259 {strides = array<i32>} : memref<4x8x512xf32, #tpu.memory_space<vmem>>, vector<1x8x512xf32>,
    %260 = vector.extract_strided_slice %25 {offsets = [24, 0], sizes = [8, 512], strides = [1, 1]} : vector<32x512xf32> to vector<8x512xf32>
    %cst_85 = arith.constant dense<0.000000e+00> : vector<512xf32>
    %261 = vector.multi_reduction <add>, %260, %cst_85 [0] : vector<8x512xf32> to vector<512xf32>
    %262 = vector.shape_cast %261 : vector<512xf32> to vector<1x512xf32>
    %cst_86 = arith.constant 8.000000e+00 : f32
    %263 = vector.broadcast %cst_86 : f32 to vector<1x512xf32>
    %264 = arith.divf %262, %263 : vector<1x512xf32>
    %cst_87 = arith.constant dense<0.000000e+00> : vector<512xf32>
    %265 = vector.multi_reduction <add>, %33, %cst_87 [0] : vector<8x512xf32> to vector<512xf32>
    %266 = vector.shape_cast %265 : vector<512xf32> to vector<1x512xf32>
    %cst_88 = arith.constant 8.000000e+00 : f32
    %267 = vector.broadcast %cst_88 : f32 to vector<1x512xf32>
    %268 = arith.divf %266, %267 : vector<1x512xf32>
    %269 = vector.broadcast %125 : f32 to vector<1x512xf32>
    %270 = arith.mulf %269, %264 : vector<1x512xf32>
    %271 = vector.broadcast %126 : f32 to vector<1x512xf32>
    %272 = arith.mulf %271, %268 : vector<1x512xf32>
    %273 = arith.addf %270, %272 : vector<1x512xf32>
    %274 = vector.broadcast %127 : f32 to vector<1x512xf32>
    %275 = arith.addf %273, %274 : vector<1x512xf32>
    %276 = arith.negf %275 : vector<1x512xf32>
    %277 = math.exp %276 : vector<1x512xf32>
    %cst_89 = arith.constant 1.000000e+00 : f32
    %278 = vector.broadcast %cst_89 : f32 to vector<1x512xf32>
    %279 = arith.addf %278, %277 : vector<1x512xf32>
    %280 = arith.divf %278, %279 : vector<1x512xf32>
    %281 = vector.broadcast %128 : f32 to vector<1x512xf32>
    %282 = arith.mulf %281, %264 : vector<1x512xf32>
    %283 = vector.broadcast %129 : f32 to vector<1x512xf32>
    %284 = arith.mulf %283, %268 : vector<1x512xf32>
    %285 = arith.addf %282, %284 : vector<1x512xf32>
    %286 = vector.broadcast %130 : f32 to vector<1x512xf32>
    %287 = arith.addf %285, %286 : vector<1x512xf32>
    %288 = arith.negf %287 : vector<1x512xf32>
    %289 = math.exp %288 : vector<1x512xf32>
    %cst_90 = arith.constant 1.000000e+00 : f32
    %290 = vector.broadcast %cst_90 : f32 to vector<1x512xf32>
    %291 = arith.addf %290, %289 : vector<1x512xf32>
    %292 = arith.divf %290, %291 : vector<1x512xf32>
    %293 = arith.mulf %260, %119 : vector<8x512xf32>
    %294 = vector.broadcast %280 : vector<1x512xf32> to vector<8x512xf32>
    %295 = arith.mulf %293, %294 : vector<8x512xf32>
    %296 = arith.mulf %33, %124 : vector<8x512xf32>
    %297 = vector.broadcast %292 : vector<1x512xf32> to vector<8x512xf32>
    %298 = arith.mulf %296, %297 : vector<8x512xf32>
    %299 = arith.addf %295, %298 : vector<8x512xf32>
    %c3_91 = arith.constant 3 : index
    %c0_92 = arith.constant 0 : index
    %c0_93 = arith.constant 0 : index
    %300 = vector.load %arg9[%c3_91, %c0_92, %c0_93] : memref<4x8x512xf32, #tpu.memory_space<vmem>>, vector<1x8x512xf32>
    %301 = vector.shape_cast %300 : vector<1x8x512xf32> to vector<8x512xf32>
    %302 = vector.shape_cast %299 : vector<8x512xf32> to vector<1x8x512xf32>
    tpu.vector_store %arg9[%c3_91, %c0_92, %c0_93], %302 {strides = array<i32>} : memref<4x8x512xf32, #tpu.memory_space<vmem>>, vector<1x8x512xf32>,
    return
  }
  func.func @transform_0(%arg0: i32) -> (i32, i32) {
    %c0_i32 = arith.constant 0 : i32
    %c0_i32_0 = arith.constant 0 : i32
    return %c0_i32, %arg0 : i32, i32
  }
  func.func @transform_1(%arg0: i32) -> (i32, i32) {
    %c0_i32 = arith.constant 0 : i32
    %c0_i32_0 = arith.constant 0 : i32
    %c0_i32_1 = arith.constant 0 : i32
    return %c0_i32, %c0_i32_0 : i32, i32
  }
  func.func @transform_2(%arg0: i32) -> (i32, i32, i32) {
    %c0_i32 = arith.constant 0 : i32
    %c0_i32_0 = arith.constant 0 : i32
    %c0_i32_1 = arith.constant 0 : i32
    return %c0_i32, %c0_i32_0, %arg0 : i32, i32, i32
  }
  func.func @transform_3(%arg0: i32) -> (i32, i32) {
    %c0_i32 = arith.constant 0 : i32
    %c0_i32_0 = arith.constant 0 : i32
    %c0_i32_1 = arith.constant 0 : i32
    return %c0_i32, %c0_i32_0 : i32, i32
  }
  func.func @transform_4(%arg0: i32) -> (i32, i32) {
    %c0_i32 = arith.constant 0 : i32
    %c0_i32_0 = arith.constant 0 : i32
    %c0_i32_1 = arith.constant 0 : i32
    return %c0_i32, %c0_i32_0 : i32, i32
  }
  func.func @transform_5(%arg0: i32) -> (i32, i32) {
    %c0_i32 = arith.constant 0 : i32
    %c0_i32_0 = arith.constant 0 : i32
    %c0_i32_1 = arith.constant 0 : i32
    return %c0_i32, %c0_i32_0 : i32, i32
  }
  func.func @transform_6(%arg0: i32) -> (i32, i32) {
    %c0_i32 = arith.constant 0 : i32
    %c0_i32_0 = arith.constant 0 : i32
    %c0_i32_1 = arith.constant 0 : i32
    return %c0_i32, %c0_i32_0 : i32, i32
  }
  func.func @transform_7(%arg0: i32) -> i32 {
    %c0_i32 = arith.constant 0 : i32
    %c0_i32_0 = arith.constant 0 : i32
    return %c0_i32 : i32
  }
  func.func @transform_8(%arg0: i32) -> (i32, i32, i32) {
    %c0_i32 = arith.constant 0 : i32
    %c0_i32_0 = arith.constant 0 : i32
    %c0_i32_1 = arith.constant 0 : i32
    return %c0_i32, %c0_i32_0, %arg0 : i32, i32, i32
  }
}

</mosaic_0001>

<bundles_post_ra>
// kernel: tile.8
= control target key start
LH: loop header
LB: loop body
LE: loop exit
PB: predicated region body
PF: predicated region fallthrough
CT: control target
= control target key end

     0   :  { %s22_s0 = inlined_call_operand.vmem [shape: f32[8], index: 0, kind: input, shape index: {}]   ;;  %s23_s1 = inlined_call_operand.vmem [shape: f32[4,8], index: 1, kind: output, shape index: {}]  }
   0x1   :  { %v4_v0 = vld [vmem:[%s22_s0] ss:$0 sm:$0xff] }
   0x2   :  { %5 = vst [vmem:[%s23_s1] sm:$0xf] %v4_v0 }

// kernel: tile.0
= control target key start
LH: loop header
LB: loop body
LE: loop exit
PB: predicated region body
PF: predicated region fallthrough
CT: control target
= control target key end

     0   :  { %s66_s8 = smov 125   ;;  %vm7_vm0 = vcmask 7168   ;;  %s67_s11 = smov 126   ;;  %s117_s0 = inlined_call_operand.vmem [shape: f32[4,8], index: 0, kind: input, shape index: {}]   ;;  %s118_s1 = inlined_call_operand.vmem [shape: f32[32,1], index: 1, kind: output, shape index: {}]  }
   0x1   :  { %v4_v0 = vld [vmem:[%s117_s0] sm:$0xf]  ;;  %s65_s0 = smov 127   ;;  %s68_s12 = smov 124  }
   0x2   :  { %5 = vst [vmem:[#allocation0] sm:$0xf] %v4_v0  ;;  %s69_s13 = smov 123   ;;  %s70_s14 = smov 122  }
   0x3   :  { %s71_s15 = smov 121  }
   0x9   :  { %v9_v1 = vld [vmem:[#allocation0] sm:$0xf]  }
   0xa   :  { %v21_v2 = vld [vmem:[#allocation0] sm:$0xf]   ;;  %10 = vrot.lane.b32.xlu0 %v9_v1, %s65_s0 }
   0xb   :  { %22 = vrot.lane.b32.xlu1 %v21_v2, %s66_s8  ;;  %v15_v3 = vld [vmem:[#allocation0] sm:$0xf]  }
   0xc   :  { %v27_v4 = vld [vmem:[#allocation0] sm:$0xf]  }
   0xd   :  { %v6_v5 = vld [vmem:[#allocation0] sm:$0xf]  }
   0xe   :  { %8 = vst.msk [vmem:[%s118_s1] ss:$8 sm:$0xf] %vm7_vm0, %v6_v5   ;;  %16 = vrot.lane.b32.xlu0 %v15_v3, %s67_s11  ;;  %v33_v6 = vld [vmem:[#allocation0] sm:$0xf]  }
   0xf   :  { %28 = vrot.lane.b32.xlu1 %v27_v4, %s68_s12  ;;  %v39_v7 = vld [vmem:[#allocation0] sm:$0xf]  }
  0x10   :  { %v45_v8 = vld [vmem:[#allocation0] sm:$0xf]  }
  0x12   :  { %34 = vrot.lane.b32.xlu0 %v33_v6, %s69_s13 }
  0x13   :  { %40 = vrot.lane.b32.xlu1 %v39_v7, %s70_s14 }
  0x16   :  { %46 = vrot.lane.b32.xlu0 %v45_v8, %s71_s15 }
  0x7c   :  { %v11_v9 = vpop.permute.xlu0 %10  }
  0x7d   :  { %v23_v10 = vpop.permute.xlu1 %22   ;;  %51 = vst.msk [vmem:[%s118_s1 + $0x1] ss:$8 sm:$0xf] %vm7_vm0, %v11_v9  }
  0x7e   :  { %53 = vst.msk [vmem:[%s118_s1 + $0x3] ss:$8 sm:$0xf] %vm7_vm0, %v23_v10  }
  0x80   :  { %v17_v11 = vpop.permute.xlu0 %16  }
  0x81   :  { %v29_v12 = vpop.permute.xlu1 %28   ;;  %52 = vst.msk [vmem:[%s118_s1 + $0x2] ss:$8 sm:$0xf] %vm7_vm0, %v17_v11  }
  0x82   :  { %54 = vst.msk [vmem:[%s118_s1 + $0x4] ss:$8 sm:$0xf] %vm7_vm0, %v29_v12  }
  0x84   :  { %v35_v13 = vpop.permute.xlu0 %34  }
  0x85   :  { %v41_v14 = vpop.permute.xlu1 %40   ;;  %55 = vst.msk [vmem:[%s118_s1 + $0x5] ss:$8 sm:$0xf] %vm7_vm0, %v35_v13  }
  0x86   :  { %56 = vst.msk [vmem:[%s118_s1 + $0x6] ss:$8 sm:$0xf] %vm7_vm0, %v41_v14  }
  0x88   :  { %v47_v15 = vpop.permute.xlu0 %46  }
  0x89   :  { %57 = vst.msk [vmem:[%s118_s1 + $0x7] ss:$8 sm:$0xf] %vm7_vm0, %v47_v15  }

</bundles_post_ra>
